<compile_context>
chip_gen: v7x
topology: tpu7x:2x2x1
jax: 0.10.0
libtpu: 0.0.40
codegen_flags: <defaults>
</compile_context>

<pallas_src>
import jax
import jax.numpy as jnp
from jax import lax
from jax.experimental import pallas as pl
from jax.experimental.pallas import tpu as pltpu

HIDDEN_DIM = 256
NUM_CLASSES = 5
BATCH = 2

_VMEM = pl.BlockSpec(memory_space=pltpu.MemorySpace.VMEM)


def _classifier_kernel(x_ref, w_ref, b_ref, o_ref):
    # Fused nn.Linear: logits = x @ W.T + b in one kernel body
    # (single MXU push + one VPU add, no intermediate HBM round trips).
    # The PyTorch-layout (N, K) weight is contracted on its K axis directly,
    # so no wrapper transpose/pad and only a ~5 KiB weight DMA.
    o_ref[...] = (
        lax.dot_general(
            x_ref[...],
            w_ref[...],
            dimension_numbers=(((1,), (1,)), ((), ())),  # x @ W.T
            preferred_element_type=jnp.float32,
        )
        + b_ref[...]
    )


def prepare_classifier_params(weight, bias):
    """One-time (init-time) param prep, hoisted out of the per-call path.

    weight: (NUM_CLASSES, HIDDEN_DIM) float32, PyTorch layout (kept as-is).
    bias:   (NUM_CLASSES,) float32 -> reshaped once to a (1, NUM_CLASSES) row
            so the kernel's bias add broadcasts over batch with no per-call HLOs.
    """
    return weight, bias.reshape(1, -1)


def classifier_forward(features, weight, bias_row):
    """PyTorch nn.Linear semantics: logits = features @ weight.T + bias.

    features: (B, HIDDEN_DIM) float32
    weight:   (NUM_CLASSES, HIDDEN_DIM) float32   (PyTorch layout, unmodified)
    bias_row: (1, NUM_CLASSES) float32            (from prepare_classifier_params)
    returns:  (B, NUM_CLASSES) float32
    """
    B, K = features.shape
    N = weight.shape[0]

    cost = pl.CostEstimate(
        flops=2 * B * K * N,
        transcendentals=0,
        bytes_accessed=4 * (B * K + N * K + N + B * N),
    )

    return pl.pallas_call(
        _classifier_kernel,
        out_shape=jax.ShapeDtypeStruct((B, N), jnp.float32),
        in_specs=[_VMEM, _VMEM, _VMEM],
        out_specs=_VMEM,
        cost_estimate=cost,
    )(features, weight, bias_row)


if __name__ == "__main__":
    key = jax.random.PRNGKey(0)
    k_feat, k_w, k_b = jax.random.split(key, 3)

    # Deterministic small-shape inputs consistent with the module:
    # features (batch=2, hidden_dim=256); PyTorch-style Linear params.
    features = jax.random.normal(k_feat, (BATCH, HIDDEN_DIM), dtype=jnp.float32)
    bound = 1.0 / (HIDDEN_DIM ** 0.5)
    weight = jax.random.uniform(
        k_w, (NUM_CLASSES, HIDDEN_DIM), minval=-bound, maxval=bound,
        dtype=jnp.float32)
    bias = jax.random.uniform(
        k_b, (NUM_CLASSES,), minval=-bound, maxval=bound, dtype=jnp.float32)

    # Init-time prep (runs once, outside the per-call path).
    w_prep, b_prep = prepare_classifier_params(weight, bias)

    fwd = jax.jit(classifier_forward)
    logits = jax.block_until_ready(fwd(features, w_prep, b_prep))

    # Reference check against plain XLA (same nn.Linear semantics).
    ref = features @ weight.T + bias
    assert logits.shape == (BATCH, NUM_CLASSES)
    assert bool(jnp.all(jnp.isfinite(logits)))
    assert bool(jnp.allclose(logits, ref, atol=1e-5, rtol=1e-5))
    print("KERNEL_OK")
</pallas_src>

<mosaic_0001>
module attributes {stable_mosaic.version = 11 : i64} {
  func.func @_classifier_kernel(%arg0: memref<2x256xf32, #tpu.memory_space<vmem>>, %arg1: memref<5x256xf32, #tpu.memory_space<vmem>>, %arg2: memref<1x5xf32, #tpu.memory_space<vmem>>, %arg3: memref<2x5xf32, #tpu.memory_space<vmem>>) attributes {dimension_semantics = [], scalar_prefetch = 0 : i64, scratch_operands = 0 : i64, tpu.core_type = #tpu.core_type<tc>} {
    %c0 = arith.constant 0 : index
    %c0_0 = arith.constant 0 : index
    %0 = vector.load %arg0[%c0, %c0_0] : memref<2x256xf32, #tpu.memory_space<vmem>>, vector<2x256xf32>
    %c0_1 = arith.constant 0 : index
    %c0_2 = arith.constant 0 : index
    %1 = vector.load %arg1[%c0_1, %c0_2] : memref<5x256xf32, #tpu.memory_space<vmem>>, vector<5x256xf32>
    %cst = arith.constant dense<0.000000e+00> : vector<2x5xf32>
    %2 = tpu.matmul %0, %1, %cst {dimension_numbers = #tpu.dot_dimension_numbers<[1], [1], [0], [0], [0, 0, 1, 0], [], []>} : vector<2x256xf32>, vector<5x256xf32>, vector<2x5xf32> -> vector<2x5xf32>
    %c0_3 = arith.constant 0 : index
    %c0_4 = arith.constant 0 : index
    %3 = vector.load %arg2[%c0_3, %c0_4] : memref<1x5xf32, #tpu.memory_space<vmem>>, vector<1x5xf32>
    %4 = vector.broadcast %3 : vector<1x5xf32> to vector<2x5xf32>
    %5 = arith.addf %2, %4 : vector<2x5xf32>
    %c0_5 = arith.constant 0 : index
    %c0_6 = arith.constant 0 : index
    %6 = vector.load %arg3[%c0_5, %c0_6] : memref<2x5xf32, #tpu.memory_space<vmem>>, vector<2x5xf32>
    tpu.vector_store %arg3[%c0_5, %c0_6], %5 {strides = array<i32>} : memref<2x5xf32, #tpu.memory_space<vmem>>, vector<2x5xf32>,
    return
  }
}

</mosaic_0001>

<bundles_post_ra>
// kernel: classifier_forward.1
= control target key start
LH: loop header
LB: loop body
LE: loop exit
PB: predicated region body
PF: predicated region fallthrough
CT: control target
= control target key end

     0   :  { %8 = vsyncpa [#allocation3], 0  ;;  %s287_s0 = inlined_call_operand.hbm [shape: f32[2,256], index: 0, kind: input, shape index: {}]   ;;  %s288_s1 = inlined_call_operand.hbm [shape: f32[5,256], index: 1, kind: input, shape index: {}]   ;;  %s289_s2 = inlined_call_operand.vmem [shape: f32[1,5], index: 2, kind: input, shape index: {}]   ;;  %s290_s3 = inlined_call_operand.hbm [shape: f32[2,5], index: 3, kind: output, shape index: {}]  }
   0x1   :  { %9 = vsyncpa [#allocation6], 0 }
   0x2   :  { %10 = vsyncpa [#allocation4], 0  ;;  %s225_s12 = smov [#allocation2]   ;;  %s226_s14 = smov [#allocation5]  }
   0x3   :  { %s17_s13 = sshll.u32 %s225_s12, 4  ;;  %s27_s15 = sshll.u32 %s226_s14, 4  ;;  %s18_s13 = int_to_ptr.vmem [resolvable:$true] %s17_s13  ;;  %s28_s15 = int_to_ptr.vmem [resolvable:$true] %s27_s15 }
   0x4   :  { %s153_s18 = scalar_lea.hbm %s287_s0, 64 }
   0x5   :  { %p154_p0 = scmp.ne.s32.totalorder %s287_s0, %s153_s18  ;;  %p157_p1 = scmp.lt.u32.totalorder %s153_s18, %s287_s0 }
   0x7   :  { %p159_p2 = pnand %p157_p1, %p154_p0 }
   0x9   :  { %162 = shalt.err (!%p159_p2)
}
   0xa   :  { %s163_s23 = scalar_lea.vmem %s18_s13, 64  ;;  %p168_p4 = scmp.lt.s32.totalorder %s18_s13, %s18_s13 }
   0xb   :  { %p164_p3 = scmp.ne.s32.totalorder %s18_s13, %s163_s23  ;;  %p169_p5 = scmp.lt.s32.totalorder %s163_s23, %s163_s23 }
   0xd   :  { %p170_p6 = por %p169_p5, %p168_p4 }
   0xf   :  { %p171_p7 = pnand %p170_p6, %p164_p3 }
  0x11   :  { %174 = shalt.err (!%p171_p7)
}
  0x12   :  { %20 = dma.hbm_to_vmem [thread:$0]  %s287_s0, 64, %s18_s13, [#allocation3]  }
  0x13   :  { %s175_s28 = scalar_lea.hbm %s288_s1, 256 }
  0x14   :  { %p176_p8 = scmp.ne.s32.totalorder %s288_s1, %s175_s28  ;;  %p179_p9 = scmp.lt.u32.totalorder %s175_s28, %s288_s1 }
  0x16   :  { %p181_p10 = pnand %p179_p9, %p176_p8 }
  0x18   :  { %184 = shalt.err (!%p181_p10)
}
  0x19   :  { %s185_s6 = scalar_lea.vmem %s28_s15, 256  ;;  %p190_p12 = scmp.lt.s32.totalorder %s28_s15, %s28_s15 }
  0x1a   :  { %p186_p11 = scmp.ne.s32.totalorder %s28_s15, %s185_s6  ;;  %p191_p13 = scmp.lt.s32.totalorder %s185_s6, %s185_s6 }
  0x1c   :  { %p192_p0 = por %p191_p13, %p190_p12 }
  0x1e   :  { %p193_p1 = pnand %p192_p0, %p186_p11 }
  0x20   :  { %196 = shalt.err (!%p193_p1)
}
  0x21   :  { %30 = dma.hbm_to_vmem [thread:$0]  %s288_s1, 256, %s28_s15, [#allocation6]  }
  0x22   :  { %219 = dma.done.wait [#allocation3], 64  }
  0x23   :  { %220 = vsyncadd [#allocation3], 4294967232 }
  0x24   :  { %221 = dma.done.wait [#allocation6], 256  }
  0x25   :  { %222 = vsyncadd [#allocation6], 4294967040  ;;  %v41_v0 = vld [vmem:[#allocation5 + $0x8] sm:$0x1f]  ;;  %v40_v1 = vld [vmem:[#allocation5] sm:$0x1f] }
  0x26   :  { %60 = vmatprep.subr.mxu0 %v41_v0  ;;  %v149_v2 = vld.sshfl [vmem:[#allocation2] sm:$0x33 pattern:$0x76325410]  ;;  %s227_s10 = smov [#allocation7]   ;;  %vm130_vm0 = vcmask 33792  }
  0x27   :  { %61 = vmatpush1.xpose.msra.mxu0 %v40_v1  ;;  %v57_v3 = vcombine.high %v149_v2, %v149_v2  ;;  %v148_v4 = vld [vmem:[%s289_s2] ss:$0 sm:$0xff]  ;;  %s138_s11 = sshll.u32 %s227_s10, 4  ;;  %s139_s11 = int_to_ptr.vmem [resolvable:$true] %s138_s11 }
  0x28   :  { %s197_s1 = scalar_lea.vmem %s139_s11, 32  ;;  %p202_p3 = scmp.lt.s32.totalorder %s139_s11, %s139_s11 }
  0x29   :  { %124 = vmatprep.mubr.f32.mxu0 %v57_v3  ;;  %p198_p2 = scmp.ne.s32.totalorder %s139_s11, %s197_s1  ;;  %p203_p4 = scmp.lt.s32.totalorder %s197_s1, %s197_s1 }
  0x2a   :  { %125 = vmatmul.mubr.f32.vlgmr.msra.gmra.mrb[0].mxu0 %v149_v2 }
  0x2b   :  { %p204_p5 = por %p203_p4, %p202_p3 }
  0x2d   :  { %p205_p6 = pnand %p204_p5, %p198_p2 }
  0xfd   :  { %v126_v5 = vpop.f32.mrb[0].mxu0 }
  0xfe   :  { %v127_v6 = vadd.f32 %v148_v4, %v126_v5  ;;  %v128_v7 = vpop.f32.mrb[1].mxu0 }
 0x100   :  { %131 = vst.msk [vmem:[#allocation7] sm:$0x3] %vm130_vm0, %v127_v6 }
 0x101   :  { %208 = shalt.err (!%p205_p6)
}
 0x102   :  { %s209_s14 = scalar_lea.hbm %s290_s3, 32 }
 0x103   :  { %p210_p7 = scmp.ne.s32.totalorder %s290_s3, %s209_s14  ;;  %p213_p8 = scmp.lt.u32.totalorder %s209_s14, %s290_s3 }
 0x105   :  { %p215_p9 = pnand %p213_p8, %p210_p7 }
 0x107   :  { %218 = shalt.err (!%p215_p9)
}
 0x108   :  { %141 = dma.vmem_to_hbm [thread:$0]  %s139_s11, 32, %s290_s3, [#allocation4]  }
 0x109   :  { %223 = dma.done.wait [#allocation4], 32  }
 0x10a   :  { %224 = vsyncadd [#allocation4], 4294967264 }
 0x10b   :  { %145 = vsyncpa [#allocation3], 1 }
 0x10c   :  { %146 = vsyncpa [#allocation6], 1 }
 0x10d   :  { %147 = vsyncpa [#allocation4], 1 }

</bundles_post_ra>
